<compile_context>
chip_gen: v6e
topology: v6e:2x2x1
jax: 0.10.0
libtpu: 0.0.40
codegen_flags: <defaults>
</compile_context>

<pallas_src>
import functools

import jax
import jax.numpy as jnp
from jax import lax
from jax.experimental import pallas as pl
from jax.experimental.pallas import tpu as pltpu


def valuenet_kernel(x_ref, w1_ref, b1_ref, w2_ref, b2_ref, w3_ref, b3_ref, o_ref):
    # x_ref:  (TILE_B, state_dim) f32    -- natural layout, contiguous HBM rows
    # w1_ref: (hidden,  state_dim) bf16  -- PyTorch layout (out x in)
    # b1_ref: (hidden,  1) f32
    # w2_ref: (hidden2, hidden) bf16
    # b2_ref: (hidden2, 1) f32
    # w3_ref: (hidden2, 1) f32           -- fc3 weights as a column (VPU path)
    # b3_ref: (1, 1) f32 in SMEM
    # o_ref:  (1, TILE_B) f32            -- lane-dense output tile (batch on lanes)

    xb = x_ref[...].astype(jnp.bfloat16)

    # fc1 + ReLU: contract the last dims of w1 and the x block (trans_b matmul)
    # -> (hidden, TILE_B), batch lands on lanes without any explicit transpose.
    h1 = lax.dot_general(
        w1_ref[...], xb,
        dimension_numbers=(((1,), (1,)), ((), ())),
        preferred_element_type=jnp.float32,
    )
    h1 = jnp.maximum(h1 + b1_ref[...], 0.0)

    # fc2 + ReLU (MXU, bf16 in / f32 accumulate).
    h2 = jnp.dot(w2_ref[...], h1.astype(jnp.bfloat16),
                 preferred_element_type=jnp.float32)
    h2 = jnp.maximum(h2 + b2_ref[...], 0.0)

    # fc3: N=1 -> keep it off the MXU. VPU multiply + sublane reduce (XLU);
    # result is already lane-dense (1, TILE_B).
    out = jnp.sum(h2 * w3_ref[...], axis=0, keepdims=True) + b3_ref[0, 0]
    o_ref[...] = out.astype(o_ref.dtype)


def _round_up(x, m):
    return ((x + m - 1) // m) * m


def _pick_tile_b(batch, requested):
    """Tile-size policy: multiple of 256, >=256, and (for medium/large B) at
    least two grid steps so the 'parallel' batch axis feeds both v7x cores."""
    requested = max(256, _round_up(int(requested), 256))
    cap = max(256, _round_up(pl.cdiv(batch, 2), 256))
    return min(requested, cap)


def _vmem_limit_bytes(tile_b, state_dim, hidden, hidden2):
    x_bytes = 2 * tile_b * state_dim * 4          # streamed x, double-buffered, f32
    out_bytes = 2 * tile_b * 4                    # streamed out, double-buffered
    act_bytes = tile_b * (hidden + hidden2) * 4   # h1 / h2 f32 intermediates
    wgt_bytes = 2 * (hidden * state_dim + hidden2 * hidden)   # bf16 weights
    wgt_bytes += 4 * (hidden + 2 * hidden2)       # bias columns + w3 column (f32)
    need = x_bytes + out_bytes + act_bytes + wgt_bytes
    # 2x margin + 4 MiB for compiler scratch; clamp to sane bounds (v7x = 64 MiB).
    return int(min(48 * 1024 * 1024, max(8 * 1024 * 1024, 2 * need + 4 * 1024 * 1024)))


@functools.partial(jax.jit, static_argnames=("tile_b",))
def value_net_forward(x, params, tile_b=2048):
    """x: [B, state_dim] float32 -> [B, 1] float32.

    params are in PyTorch nn.Linear layout:
      w1 (hidden, state_dim), b1 (hidden,)
      w2 (2*hidden, hidden),  b2 (2*hidden,)
      w3 (1, 2*hidden),       b3 (1,)
    """
    w1, b1, w2, b2, w3, b3 = params
    B, state_dim = x.shape
    hidden = w1.shape[0]
    hidden2 = w2.shape[0]

    tile_b = _pick_tile_b(B, tile_b)
    n_tiles = pl.cdiv(B, tile_b)                  # ragged final block is masked by Pallas

    x_f32 = x.astype(jnp.float32)                 # streamed as-is; bf16 cast is in-kernel
    w1b = w1.astype(jnp.bfloat16)                 # tiny, resident weights
    w2b = w2.astype(jnp.bfloat16)
    b1c = b1.reshape(hidden, 1).astype(jnp.float32)
    b2c = b2.reshape(hidden2, 1).astype(jnp.float32)
    w3c = w3.reshape(hidden2, 1).astype(jnp.float32)
    b3s = b3.reshape(1, 1).astype(jnp.float32)    # scalar -> SMEM

    resident = lambda shape: pl.BlockSpec(shape, lambda i: (0, 0))

    out = pl.pallas_call(
        valuenet_kernel,
        out_shape=jax.ShapeDtypeStruct((1, B), jnp.float32),
        grid=(n_tiles,),
        in_specs=[
            pl.BlockSpec((tile_b, state_dim), lambda i: (i, 0)),   # streamed x (natural layout)
            resident(w1b.shape),
            resident(b1c.shape),
            resident(w2b.shape),
            resident(b2c.shape),
            resident(w3c.shape),
            pl.BlockSpec(memory_space=pltpu.MemorySpace.SMEM),     # b3 scalar
        ],
        out_specs=pl.BlockSpec((1, tile_b), lambda i: (0, i)),     # lane-dense output
        compiler_params=pltpu.CompilerParams(
            dimension_semantics=("parallel",),    # shard batch tiles across TCs (v7x)
            vmem_limit_bytes=_vmem_limit_bytes(tile_b, state_dim, hidden, hidden2),
        ),
    )(x_f32, w1b, b1c, w2b, b2c, w3c, b3s)

    # (1, B) lane-dense kernel output -> PyTorch-shaped (B, 1).
    return out[0].reshape(B, 1)


def init_params(key, state_dim, hidden_dim):
    """Mimic torch.nn.Linear default init: U(-1/sqrt(fan_in), 1/sqrt(fan_in)).
    Weights are stored in PyTorch layout (out_features, in_features)."""
    def linear(key, fan_in, fan_out):
        kw, kb = jax.random.split(key)
        bound = 1.0 / jnp.sqrt(jnp.float32(fan_in))
        w = jax.random.uniform(kw, (fan_out, fan_in), jnp.float32, -bound, bound)
        b = jax.random.uniform(kb, (fan_out,), jnp.float32, -bound, bound)
        return w, b

    k1, k2, k3 = jax.random.split(key, 3)
    w1, b1 = linear(k1, state_dim, hidden_dim)
    w2, b2 = linear(k2, hidden_dim, hidden_dim * 2)
    w3, b3 = linear(k3, hidden_dim * 2, 1)
    return (w1, b1, w2, b2, w3, b3)


def value_net_ref(x, params):
    """Plain-JAX reference mirroring the kernel's numerics (bf16 MXU inputs,
    f32 accumulation, f32 fc3)."""
    w1, b1, w2, b2, w3, b3 = params
    bf = lambda a: a.astype(jnp.bfloat16).astype(jnp.float32)
    h1 = jnp.maximum(bf(x) @ bf(w1).T + b1, 0.0)
    h2 = jnp.maximum(bf(h1) @ bf(w2).T + b2, 0.0)
    return jnp.sum(h2 * w3, axis=-1, keepdims=True) + b3


if __name__ == "__main__":
    key = jax.random.PRNGKey(0)
    state_dim, hidden_dim = 16, 32
    kx, kx2, kp = jax.random.split(key, 3)
    params = init_params(kp, state_dim, hidden_dim)

    # Small demo batch (single ragged block, B << tile).
    batch = 2
    x = jax.random.normal(kx, (batch, state_dim), jnp.float32)
    out = jax.block_until_ready(value_net_forward(x, params))
    ref = value_net_ref(x, params)
    assert out.shape == (batch, 1), out.shape
    assert jnp.allclose(out, ref, atol=1e-3, rtol=1e-3), (out, ref)

    # Multi-tile path: two grid steps (v7x core split) + masked ragged final block.
    batch2 = 600
    x2 = jax.random.normal(kx2, (batch2, state_dim), jnp.float32)
    out2 = jax.block_until_ready(value_net_forward(x2, params))
    ref2 = value_net_ref(x2, params)
    assert out2.shape == (batch2, 1), out2.shape
    assert jnp.allclose(out2, ref2, atol=1e-3, rtol=1e-3)

    print("KERNEL_OK")
</pallas_src>

<mosaic_0001>
module attributes {stable_mosaic.version = 11 : i64} {
  func.func @valuenet_kernel(%arg0: i32, %arg1: memref<256x16xf32, #tpu.memory_space<vmem>>, %arg2: memref<32x16xbf16, #tpu.memory_space<vmem>>, %arg3: memref<32x1xf32, #tpu.memory_space<vmem>>, %arg4: memref<64x32xbf16, #tpu.memory_space<vmem>>, %arg5: memref<64x1xf32, #tpu.memory_space<vmem>>, %arg6: memref<64x1xf32, #tpu.memory_space<vmem>>, %arg7: memref<1x1xf32, #tpu.memory_space<smem>>, %arg8: memref<1x256xf32, #tpu.memory_space<vmem>>) attributes {dimension_semantics = [#tpu.dimension_semantics<parallel>], iteration_bounds = array<i64: 1>, scalar_prefetch = 0 : i64, scratch_operands = 0 : i64, tpu.core_type = #tpu.core_type<tc>, window_params = [{transform_indices = @transform_0, window_bounds = array<i64: 256, 16>}, {pipeline_mode = #tpu.pipeline_mode<synchronous>, transform_indices = @transform_1, window_bounds = array<i64: 32, 16>}, {pipeline_mode = #tpu.pipeline_mode<synchronous>, transform_indices = @transform_2, window_bounds = array<i64: 32, 1>}, {pipeline_mode = #tpu.pipeline_mode<synchronous>, transform_indices = @transform_3, window_bounds = array<i64: 64, 32>}, {pipeline_mode = #tpu.pipeline_mode<synchronous>, transform_indices = @transform_4, window_bounds = array<i64: 64, 1>}, {pipeline_mode = #tpu.pipeline_mode<synchronous>, transform_indices = @transform_5, window_bounds = array<i64: 64, 1>}, {transform_indices = @transform_6, window_bounds = array<i64: 1, 1>}, {transform_indices = @transform_7, window_bounds = array<i64: 1, 256>}]} {
    %c0 = arith.constant 0 : index
    %c0_0 = arith.constant 0 : index
    %0 = vector.load %arg1[%c0, %c0_0] : memref<256x16xf32, #tpu.memory_space<vmem>>, vector<256x16xf32>
    %1 = arith.truncf %0 : vector<256x16xf32> to vector<256x16xbf16>
    %c0_1 = arith.constant 0 : index
    %c0_2 = arith.constant 0 : index
    %2 = vector.load %arg2[%c0_1, %c0_2] : memref<32x16xbf16, #tpu.memory_space<vmem>>, vector<32x16xbf16>
    %cst = arith.constant dense<0.000000e+00> : vector<32x256xf32>
    %3 = tpu.matmul %2, %1, %cst {dimension_numbers = #tpu.dot_dimension_numbers<[1], [1], [0], [0], [0, 0, 1, 0], [], []>} : vector<32x16xbf16>, vector<256x16xbf16>, vector<32x256xf32> -> vector<32x256xf32>
    %c0_3 = arith.constant 0 : index
    %c0_4 = arith.constant 0 : index
    %4 = vector.load %arg3[%c0_3, %c0_4] : memref<32x1xf32, #tpu.memory_space<vmem>>, vector<32x1xf32>
    %5 = vector.broadcast %4 : vector<32x1xf32> to vector<32x256xf32>
    %6 = arith.addf %3, %5 : vector<32x256xf32>
    %cst_5 = arith.constant 0.000000e+00 : f32
    %7 = vector.broadcast %cst_5 : f32 to vector<32x256xf32>
    %8 = arith.maximumf %6, %7 : vector<32x256xf32>
    %c0_6 = arith.constant 0 : index
    %c0_7 = arith.constant 0 : index
    %9 = vector.load %arg4[%c0_6, %c0_7] : memref<64x32xbf16, #tpu.memory_space<vmem>>, vector<64x32xbf16>
    %10 = arith.truncf %8 : vector<32x256xf32> to vector<32x256xbf16>
    %cst_8 = arith.constant dense<0.000000e+00> : vector<64x256xf32>
    %11 = tpu.matmul %9, %10, %cst_8 {dimension_numbers = #tpu.dot_dimension_numbers<[1], [0], [0], [1], [0, 0, 1, 1], [], []>} : vector<64x32xbf16>, vector<32x256xbf16>, vector<64x256xf32> -> vector<64x256xf32>
    %c0_9 = arith.constant 0 : index
    %c0_10 = arith.constant 0 : index
    %12 = vector.load %arg5[%c0_9, %c0_10] : memref<64x1xf32, #tpu.memory_space<vmem>>, vector<64x1xf32>
    %13 = vector.broadcast %12 : vector<64x1xf32> to vector<64x256xf32>
    %14 = arith.addf %11, %13 : vector<64x256xf32>
    %cst_11 = arith.constant 0.000000e+00 : f32
    %15 = vector.broadcast %cst_11 : f32 to vector<64x256xf32>
    %16 = arith.maximumf %14, %15 : vector<64x256xf32>
    %c0_12 = arith.constant 0 : index
    %c0_13 = arith.constant 0 : index
    %17 = vector.load %arg6[%c0_12, %c0_13] : memref<64x1xf32, #tpu.memory_space<vmem>>, vector<64x1xf32>
    %18 = vector.broadcast %17 : vector<64x1xf32> to vector<64x256xf32>
    %19 = arith.mulf %16, %18 : vector<64x256xf32>
    %cst_14 = arith.constant dense<0.000000e+00> : vector<256xf32>
    %20 = vector.multi_reduction <add>, %19, %cst_14 [0] : vector<64x256xf32> to vector<256xf32>
    %21 = vector.shape_cast %20 : vector<256xf32> to vector<1x256xf32>
    %c0_15 = arith.constant 0 : index
    %c0_16 = arith.constant 0 : index
    %22 = memref.load %arg7[%c0_15, %c0_16] : memref<1x1xf32, #tpu.memory_space<smem>>
    %23 = vector.broadcast %22 : f32 to vector<1x256xf32>
    %24 = arith.addf %21, %23 : vector<1x256xf32>
    %c0_17 = arith.constant 0 : index
    %c0_18 = arith.constant 0 : index
    %25 = vector.load %arg8[%c0_17, %c0_18] : memref<1x256xf32, #tpu.memory_space<vmem>>, vector<1x256xf32>
    tpu.vector_store %arg8[%c0_17, %c0_18], %24 {strides = array<i32>} : memref<1x256xf32, #tpu.memory_space<vmem>>, vector<1x256xf32>,
    return
  }
  func.func @transform_0(%arg0: i32) -> (i32, i32) {
    %c0_i32 = arith.constant 0 : i32
    %c0_i32_0 = arith.constant 0 : i32
    return %arg0, %c0_i32 : i32, i32
  }
  func.func @transform_1(%arg0: i32) -> (i32, i32) {
    %c0_i32 = arith.constant 0 : i32
    %c0_i32_0 = arith.constant 0 : i32
    %c0_i32_1 = arith.constant 0 : i32
    return %c0_i32, %c0_i32_0 : i32, i32
  }
  func.func @transform_2(%arg0: i32) -> (i32, i32) {
    %c0_i32 = arith.constant 0 : i32
    %c0_i32_0 = arith.constant 0 : i32
    %c0_i32_1 = arith.constant 0 : i32
    return %c0_i32, %c0_i32_0 : i32, i32
  }
  func.func @transform_3(%arg0: i32) -> (i32, i32) {
    %c0_i32 = arith.constant 0 : i32
    %c0_i32_0 = arith.constant 0 : i32
    %c0_i32_1 = arith.constant 0 : i32
    return %c0_i32, %c0_i32_0 : i32, i32
  }
  func.func @transform_4(%arg0: i32) -> (i32, i32) {
    %c0_i32 = arith.constant 0 : i32
    %c0_i32_0 = arith.constant 0 : i32
    %c0_i32_1 = arith.constant 0 : i32
    return %c0_i32, %c0_i32_0 : i32, i32
  }
  func.func @transform_5(%arg0: i32) -> (i32, i32) {
    %c0_i32 = arith.constant 0 : i32
    %c0_i32_0 = arith.constant 0 : i32
    %c0_i32_1 = arith.constant 0 : i32
    return %c0_i32, %c0_i32_0 : i32, i32
  }
  func.func @transform_6(%arg0: i32) -> (i32, i32) {
    %c0_i32 = arith.constant 0 : i32
    %c0_i32_0 = arith.constant 0 : i32
    %c0_i32_1 = arith.constant 0 : i32
    return %c0_i32, %c0_i32_0 : i32, i32
  }
  func.func @transform_7(%arg0: i32) -> (i32, i32) {
    %c0_i32 = arith.constant 0 : i32
    %c0_i32_0 = arith.constant 0 : i32
    return %c0_i32, %arg0 : i32, i32
  }
}

</mosaic_0001>

<bundles_post_ra>
// kernel: value_net_forward.1
= control target key start
LH: loop header
LB: loop body
LE: loop exit
PB: predicated region body
PF: predicated region fallthrough
CT: control target
= control target key end

     0   :  { %13 = vsyncpa [#allocation4], 0  ;;  %vm115_vm0 = vcmask 130048   ;;  %v617_v6 = vmov 0   ;;  %vm311_vm1 = vcmask 261120   ;;  %s870_s0 = inlined_call_operand.vmem [shape: f32[2,16], index: 0, kind: input, shape index: {}]   ;;  %s871_s1 = inlined_call_operand.vmem [shape: bf16[32,16], index: 1, kind: input, shape index: {}]   ;;  %s872_s2 = inlined_call_operand.vmem [shape: f32[32,1], index: 2, kind: input, shape index: {}]   ;;  %s873_s3 = inlined_call_operand.vmem [shape: bf16[64,32], index: 3, kind: input, shape index: {}]   ;;  %s874_s4 = inlined_call_operand.vmem [shape: f32[64,1], index: 4, kind: input, shape index: {}]   ;;  %s875_s5 = inlined_call_operand.vmem [shape: f32[64,1], index: 5, kind: input, shape index: {}]   ;;  %s876_s6 = inlined_call_operand.<no memory space> [shape: f32[1,1], index: 6, kind: input, shape index: {}]   ;;  %s877_s7 = inlined_call_operand.hbm [shape: f32[1,2], index: 7, kind: output, shape index: {}]  }
   0x1   :  { %v59_v0 = vld [vmem:[%s870_s0 + $0xf0] sm:$0xff]  ;;  %v60_v1 = vld [vmem:[%s870_s0 + $0xf8] sm:$0xff]  ;;  %v57_v5 = vld [vmem:[%s870_s0 + $0xe0] sm:$0xff]  ;;  %587 = vset.pattern.permute.xlu0 %v617_v6  ;;  %588 = vset.pattern.permute.xlu1 %v617_v6 }
   0x2   :  { %v76_v2 = vpack.c.bf16 %v60_v1, %v59_v0  ;;  %v43_v3 = vld [vmem:[%s870_s0 + $0x70] sm:$0xff]  ;;  %v44_v4 = vld [vmem:[%s870_s0 + $0x78] sm:$0xff]  ;;  %v58_v8 = vld [vmem:[%s870_s0 + $0xe8] sm:$0xff]  ;;  %356 = vmatprep.mubr.bf16.mxu1 %v617_v6 }
   0x3   :  { %v68_v7 = vpack.c.bf16 %v44_v4, %v43_v3  ;;  %v75_v9 = vpack.c.bf16 %v58_v8, %v57_v5  ;;  %v41_v10 = vld [vmem:[%s870_s0 + $0x60] sm:$0xff]  ;;  %v42_v11 = vld [vmem:[%s870_s0 + $0x68] sm:$0xff]  ;;  %v55_v14 = vld [vmem:[%s870_s0 + $0xd0] sm:$0xff] }
   0x4   :  { %576 = vmatprep.subr.msk.bf16.mxu0 %vm115_vm0, %v76_v2  ;;  %v67_v13 = vpack.c.bf16 %v42_v11, %v41_v10  ;;  %v56_v15 = vld [vmem:[%s870_s0 + $0xd8] sm:$0xff]  ;;  %v39_v18 = vld [vmem:[%s870_s0 + $0x50] sm:$0xff]  ;;  %v706_v20 = vld [vmem:[%s871_s1] sm:$0xff]  }
   0x5   :  { %v144_v12 = vsel %vm115_vm0, %v68_v7, 0  ;;  %v74_v17 = vpack.c.bf16 %v56_v15, %v55_v14  ;;  %v40_v19 = vld [vmem:[%s870_s0 + $0x58] sm:$0xff]  ;;  %572 = vmatprep.mubr.msk.bf16.mxu0 %vm115_vm0, %v706_v20  ;;  %v83_v21 = vld [vmem:[%s872_s2 + $0x10] sm:$0xff]  ;;  %v81_v22 = vld [vmem:[%s872_s2] sm:$0xff] }
   0x6   :  { %557 = vmatpush3.bf16.xpose.msra.mxu0 %v144_v12  ;;  %v141_v16 = vsel %vm115_vm0, %v67_v13, 0  ;;  %v66_v23 = vpack.c.bf16 %v40_v19, %v39_v18  ;;  %97 = vperm.xlu0 %587, %v83_v21   ;;  %v53_v24 = vld [vmem:[%s870_s0 + $0xc0] sm:$0xff]  ;;  %v54_v25 = vld [vmem:[%s870_s0 + $0xc8] sm:$0xff]  ;;  %v84_v26 = vld [vmem:[%s872_s2 + $0x18] sm:$0xff] }
   0x7   :  { %577 = vmatprep.subr.msk.bf16.mxu0 %vm115_vm0, %v75_v9  ;;  %87 = vperm.xlu1 %588, %v81_v22   ;;  %v82_v27 = vld [vmem:[%s872_s2 + $0x8] sm:$0xff]  ;;  %v73_v29 = vpack.c.bf16 %v54_v25, %v53_v24  ;;  %v37_v30 = vld [vmem:[%s870_s0 + $0x40] sm:$0xff]  ;;  %v51_v35 = vld [vmem:[%s870_s0 + $0xb0] sm:$0xff] }
   0x8   :  { %v138_v28 = vsel %vm115_vm0, %v66_v23, 0  ;;  %v38_v31 = vld [vmem:[%s870_s0 + $0x48] sm:$0xff]  ;;  %v243_v32 = vld [vmem:[%s874_s4] sm:$0xff]  ;;  %v52_v36 = vld [vmem:[%s870_s0 + $0xb8] sm:$0xff] }
   0x9   :  { %v244_v33 = vld [vmem:[%s874_s4 + $0x8] sm:$0xff]  ;;  %v65_v34 = vpack.c.bf16 %v38_v31, %v37_v30  ;;  %v245_v37 = vld [vmem:[%s874_s4 + $0x10] sm:$0xff]  ;;  %v246_v38 = vld [vmem:[%s874_s4 + $0x18] sm:$0xff]  ;;  %v72_v40 = vpack.c.bf16 %v52_v36, %v51_v35 }
   0xa   :  { %102 = vperm.xlu0 %587, %v84_v26   ;;  %v35_v41 = vld [vmem:[%s870_s0 + $0x30] sm:$0xff]  ;;  %v36_v42 = vld [vmem:[%s870_s0 + $0x38] sm:$0xff]  ;;  %v413_v43 = vld [vmem:[%s875_s5] sm:$0xff] }
   0xb   :  { %92 = vperm.xlu1 %588, %v82_v27   ;;  %v135_v39 = vsel %vm115_vm0, %v65_v34, 0  ;;  %v414_v44 = vld [vmem:[%s875_s5 + $0x8] sm:$0xff]  ;;  %v64_v45 = vpack.c.bf16 %v36_v42, %v35_v41  ;;  %v49_v46 = vld [vmem:[%s870_s0 + $0xa0] sm:$0xff]  ;;  %v415_v49 = vld [vmem:[%s875_s5 + $0x10] sm:$0xff] }
   0xc   :  { %v50_v47 = vld [vmem:[%s870_s0 + $0xa8] sm:$0xff]  ;;  %v247_v48 = vld [vmem:[%s874_s4 + $0x20] sm:$0xff]  ;;  %v416_v55 = vld [vmem:[%s875_s5 + $0x18] sm:$0xff] }
   0xd   :  { %v132_v50 = vsel %vm115_vm0, %v64_v45, 0  ;;  %v71_v51 = vpack.c.bf16 %v50_v47, %v49_v46  ;;  %v33_v52 = vld [vmem:[%s870_s0 + $0x20] sm:$0xff]  ;;  %v34_v53 = vld [vmem:[%s870_s0 + $0x28] sm:$0xff]  ;;  %v47_v57 = vld [vmem:[%s870_s0 + $0x90] sm:$0xff] }
   0xe   :  { %559 = vmatpush3.bf16.xpose.msra.mxu0 %v141_v16  ;;  %253 = vperm.xlu0 %587, %v243_v32   ;;  %v248_v54 = vld [vmem:[%s874_s4 + $0x28] sm:$0xff]  ;;  %v63_v56 = vpack.c.bf16 %v34_v53, %v33_v52  ;;  %v48_v58 = vld [vmem:[%s870_s0 + $0x98] sm:$0xff]  ;;  %v249_v59 = vld [vmem:[%s874_s4 + $0x30] sm:$0xff] }
   0xf   :  { %578 = vmatprep.subr.msk.bf16.mxu0 %vm115_vm0, %v74_v17  ;;  %258 = vperm.xlu1 %588, %v244_v33   ;;  %v417_v60 = vld [vmem:[%s875_s5 + $0x20] sm:$0xff]  ;;  %v70_v62 = vpack.c.bf16 %v48_v58, %v47_v57  ;;  %v31_v63 = vld [vmem:[%s870_s0 + $0x10] sm:$0xff]  ;;  %v32_v0 = vld [vmem:[%s870_s0 + $0x18] sm:$0xff] }
  0x10   :  { %v129_v61 = vsel %vm115_vm0, %v63_v56, 0  ;;  %v250_v1 = vld [vmem:[%s874_s4 + $0x38] sm:$0xff]  ;;  %v418_v2 = vld [vmem:[%s875_s5 + $0x28] sm:$0xff]  ;;  %v62_v3 = vpack.c.bf16 %v32_v0, %v31_v63  ;;  %v45_v4 = vld [vmem:[%s870_s0 + $0x80] sm:$0xff] }
  0x11   :  { %v46_v5 = vld [vmem:[%s870_s0 + $0x88] sm:$0xff]  ;;  %v419_v7 = vld [vmem:[%s875_s5 + $0x30] sm:$0xff]  ;;  %v420_v8 = vld [vmem:[%s875_s5 + $0x38] sm:$0xff] }
  0x12   :  { %263 = vperm.xlu0 %587, %v245_v37   ;;  %v126_v9 = vsel %vm115_vm0, %v62_v3, 0  ;;  %v69_v10 = vpack.c.bf16 %v46_v5, %v45_v4  ;;  %v29_v11 = vld [vmem:[%s870_s0] sm:$0xff]  ;;  %v30_v12 = vld [vmem:[%s870_s0 + $0x8] sm:$0xff] }
  0x13   :  { %268 = vperm.xlu1 %588, %v246_v38   ;;  %v61_v13 = vpack.c.bf16 %v30_v12, %v29_v11  ;;  %v590_v15 = vld [vmem:[%s871_s1 + $0x8] sm:$0xff]  }
  0x15   :  { %v123_v14 = vsel %vm115_vm0, %v61_v13, 0 }
  0x16   :  { %561 = vmatpush3.bf16.xpose.msra.mxu0 %v138_v28  ;;  %423 = vperm.xlu0 %587, %v413_v43  }
  0x17   :  { %579 = vmatprep.subr.msk.bf16.mxu0 %vm115_vm0, %v73_v29  ;;  %428 = vperm.xlu1 %588, %v414_v44  }
  0x1a   :  { %273 = vperm.xlu0 %587, %v247_v48   ;;  %v591_v48 = vld [vmem:[%s873_s3] sm:$0xff]  }
  0x1b   :  { %433 = vperm.xlu1 %588, %v415_v49   ;;  %v592_v49 = vld [vmem:[%s873_s3 + $0x8] sm:$0xff]  }
  0x1e   :  { %563 = vmatpush3.bf16.xpose.msra.mxu0 %v135_v39  ;;  %278 = vperm.xlu0 %587, %v248_v54  }
  0x1f   :  { %580 = vmatprep.subr.msk.bf16.mxu0 %vm115_vm0, %v72_v40  ;;  %438 = vperm.xlu1 %588, %v416_v55  }
  0x22   :  { %283 = vperm.xlu0 %587, %v249_v59  }
  0x23   :  { %443 = vperm.xlu1 %588, %v417_v60  }
  0x26   :  { %565 = vmatpush3.bf16.xpose.msra.mxu0 %v132_v50  ;;  %288 = vperm.xlu0 %587, %v250_v1   ;;  %v593_v50 = vld [vmem:[%s873_s3 + $0x10] sm:$0xff]  }
  0x27   :  { %581 = vmatprep.subr.msk.bf16.mxu0 %vm115_vm0, %v71_v51  ;;  %448 = vperm.xlu1 %588, %v418_v2   ;;  %v594_v51 = vld [vmem:[%s873_s3 + $0x18] sm:$0xff]  }
  0x2a   :  { %453 = vperm.xlu0 %587, %v419_v7  }
  0x2b   :  { %458 = vperm.xlu1 %588, %v420_v8  }
  0x2e   :  { %567 = vmatpush3.bf16.xpose.msra.mxu0 %v129_v61 }
  0x2f   :  { %582 = vmatprep.subr.msk.bf16.mxu0 %vm115_vm0, %v70_v62 }
  0x36   :  { %569 = vmatpush3.bf16.xpose.msra.mxu0 %v126_v9 }
  0x37   :  { %583 = vmatprep.subr.msk.bf16.mxu0 %vm115_vm0, %v69_v10 }
  0x3e   :  { %571 = vmatpush3.bf16.xpose.msra.mxu0 %v123_v14 }
  0x45   :  { %573 = vmatmul.mubr.msk.bf16.vlgmr.msra.gmra.mxu0 %vm115_vm0, %v706_v20 }
  0x46   :  { %574 = vmatprep.mubr.msk.bf16.mxu0 %vm115_vm0, %v590_v15 }
  0x4d   :  { %575 = vmatmul.mubr.msk.bf16.gmra.mxu0 %vm115_vm0, %v590_v15 }
  0x81   :  { %v98_v19 = vpop.permute.xlu0 %97 }
  0x82   :  { %v88_v21 = vpop.permute.xlu1 %87 }
  0x85   :  { %v103_v25 = vpop.permute.xlu0 %102 }
  0x86   :  { %v93_v26 = vpop.permute.xlu1 %92 }
  0x89   :  { %v254_v52 = vpop.permute.xlu0 %253 }
  0x8a   :  { %v259_v53 = vpop.permute.xlu1 %258 }
  0x8d   :  { %v264_v54 = vpop.permute.xlu0 %263 }
  0x8e   :  { %v269_v55 = vpop.permute.xlu1 %268 }
  0x91   :  { %v424_v56 = vpop.permute.xlu0 %423 }
  0x92   :  { %v429_v58 = vpop.permute.xlu1 %428 }
  0x95   :  { %v274_v60 = vpop.permute.xlu0 %273 }
  0x96   :  { %v434_v63 = vpop.permute.xlu1 %433 }
  0x99   :  { %v279_v1 = vpop.permute.xlu0 %278 }
  0x9a   :  { %v439_v9 = vpop.permute.xlu1 %438 }
  0x9d   :  { %v284_v15 = vpop.permute.xlu0 %283 }
 0x105   :  { %v204_v16 = vpop.f32.mrf.mxu0 }
 0x106   :  { %v205_v39 = vadd.f32 %v204_v16, %v88_v21 }
 0x107   :  { %v206_v17 = vpop.f32.mrf.mxu0 }
 0x108   :  { %v207_v32 = vadd.f32 %v206_v17, %v88_v21  ;;  %v223_v46 = vmax.f32 %v205_v39, 0.0 }
 0x109   :  { %v208_v18 = vpop.f32.mrf.mxu0 }
 0x10a   :  { %v209_v34 = vadd.f32 %v208_v18, %v93_v26  ;;  %v224_v41 = vmax.f32 %v207_v32, 0.0 }
 0x10b   :  { %v210_v22 = vpop.f32.mrf.mxu0 }
 0x10c   :  { %v211_v28 = vadd.f32 %v210_v22, %v93_v26  ;;  %v225_v43 = vmax.f32 %v209_v34, 0.0 }
 0x10d   :  { %v214_v23 = vpop.f32.mrf.mxu0 }
 0x10e   :  { %v215_v31 = vadd.f32 %v214_v23, %v98_v19  ;;  %v226_v36 = vmax.f32 %v211_v28, 0.0  ;;  %v239_v47 = vpack.c.bf16 %v225_v43, %v223_v46 }
 0x10f   :  { %v216_v24 = vpop.f32.mrf.mxu0 }
 0x110   :  { %v217_v29 = vadd.f32 %v216_v24, %v98_v19  ;;  %v227_v40 = vmax.f32 %v215_v31, 0.0  ;;  %v240_v45 = vpack.c.bf16 %v226_v36, %v224_v41  ;;  %v289_v36 = vpop.permute.xlu0 %288 }
 0x111   :  { %v218_v27 = vpop.f32.mrf.mxu0 }
 0x112   :  { %v219_v30 = vadd.f32 %v218_v27, %v103_v25  ;;  %v228_v37 = vmax.f32 %v217_v29, 0.0  ;;  %v444_v29 = vpop.permute.xlu1 %443 }
 0x113   :  { %v220_v20 = vpop.f32.mrf.mxu0 }
 0x114   :  { %v221_v33 = vadd.f32 %v220_v20, %v103_v25  ;;  %v229_v35 = vmax.f32 %v219_v30, 0.0 }
 0x116   :  { %v230_v38 = vmax.f32 %v221_v33, 0.0  ;;  %v241_v44 = vpack.c.bf16 %v229_v35, %v227_v40 }
 0x118   :  { %v242_v42 = vpack.c.bf16 %v230_v38, %v228_v37 }
 0x11a   :  { %336 = vmatprep.subr.bf16.mxu1 %v242_v42 }
 0x11b   :  { %337 = vmatpush1.bf16.msra.mxu1 %v241_v44 }
 0x11c   :  { %338 = vmatprep.subr.bf16.mxu1 %v240_v45 }
 0x11f   :  { %339 = vmatpush1.bf16.msra.mxu1 %v239_v47 }
 0x122   :  { %552 = vmatmul.mubr.msk.bf16.vlgmr.msra.gmra.mxu1 %vm311_vm1, %v591_v48 }
 0x123   :  { %366 = vmatprep.mubr.bf16.mxu1 %v617_v6 }
 0x12a   :  { %553 = vmatmul.mubr.msk.bf16.gmra.mxu1 %vm311_vm1, %v592_v49 }
 0x12b   :  { %376 = vmatprep.mubr.bf16.mxu1 %v617_v6 }
 0x132   :  { %554 = vmatmul.mubr.msk.bf16.gmra.mxu1 %vm311_vm1, %v593_v50 }
 0x133   :  { %386 = vmatprep.mubr.bf16.mxu1 %v617_v6 }
 0x13a   :  { %555 = vmatmul.mubr.msk.bf16.gmra.mxu1 %vm311_vm1, %v594_v51  ;;  %v449_v51 = vpop.permute.xlu1 %448 }
 0x1e2   :  { %v358_v57 = vpop.f32.mrf.mxu1 }
 0x1e3   :  { %v359_v3 = vadd.f32 %v358_v57, %v254_v52 }
 0x1e4   :  { %v360_v59 = vpop.f32.mrf.mxu1 }
 0x1e5   :  { %v361_v8 = vadd.f32 %v360_v59, %v254_v52  ;;  %v397_v14 = vmax.f32 %v359_v3, 0.0  ;;  %v454_v59 = vpop.permute.xlu0 %453 }
 0x1e6   :  { %v362_v61 = vpop.f32.mrf.mxu1 }
 0x1e7   :  { %v363_v6 = vadd.f32 %v362_v61, %v259_v53  ;;  %v398_v21 = vmax.f32 %v361_v8, 0.0  ;;  %v461_v27 = vmul.f32 %v424_v56, %v397_v14 }
 0x1e8   :  { %v364_v62 = vpop.f32.mrf.mxu1 }
 0x1e9   :  { %v365_v4 = vadd.f32 %v364_v62, %v259_v53  ;;  %v399_v10 = vmax.f32 %v363_v6, 0.0  ;;  %v462_v34 = vmul.f32 %v424_v56, %v398_v21 }
 0x1ea   :  { %v368_v0 = vpop.f32.mrf.mxu1 }
 0x1eb   :  { %v369_v5 = vadd.f32 %v368_v0, %v264_v54  ;;  %v400_v16 = vmax.f32 %v365_v4, 0.0  ;;  %v463_v23 = vmul.f32 %v429_v58, %v399_v10 }
 0x1ec   :  { %v370_v2 = vpop.f32.mrf.mxu1 }
 0x1ed   :  { %v371_v11 = vadd.f32 %v370_v2, %v264_v54  ;;  %v401_v17 = vmax.f32 %v369_v5, 0.0  ;;  %v464_v30 = vmul.f32 %v429_v58, %v400_v16  ;;  %v477_v37 = vadd.f32 %v463_v23, %v461_v27 }
 0x1ee   :  { %v372_v7 = vpop.f32.mrf.mxu1 }
 0x1ef   :  { %v373_v12 = vadd.f32 %v372_v7, %v269_v55  ;;  %v402_v24 = vmax.f32 %v371_v11, 0.0  ;;  %v465_v31 = vmul.f32 %v434_v63, %v401_v17  ;;  %v490_v44 = vadd.f32 %v464_v30, %v462_v34 }
 0x1f0   :  { %v374_v13 = vpop.f32.mrf.mxu1  ;;  %v504_v34 = vstv %s876_s6 }
 0x1f1   :  { %v375_v18 = vadd.f32 %v374_v13, %v269_v55  ;;  %v403_v25 = vmax.f32 %v373_v12, 0.0  ;;  %v466_v38 = vmul.f32 %v434_v63, %v402_v24  ;;  %v478_v45 = vadd.f32 %v477_v37, %v465_v31 }
 0x1f2   :  { %v378_v19 = vpop.f32.mrf.mxu1 }
 0x1f3   :  { %v379_v22 = vadd.f32 %v378_v19, %v274_v60  ;;  %v404_v20 = vmax.f32 %v375_v18, 0.0  ;;  %v467_v39 = vmul.f32 %v439_v9, %v403_v25  ;;  %v491_v52 = vadd.f32 %v490_v44, %v466_v38 }
 0x1f4   :  { %v380_v26 = vpop.f32.mrf.mxu1 }
 0x1f5   :  { %v381_v28 = vadd.f32 %v380_v26, %v274_v60  ;;  %v405_v32 = vmax.f32 %v379_v22, 0.0  ;;  %v468_v46 = vmul.f32 %v439_v9, %v404_v20  ;;  %v479_v53 = vadd.f32 %v478_v45, %v467_v39  ;;  %v459_v9 = vpop.permute.xlu1 %458 }
 0x1f6   :  { %v382_v33 = vpop.f32.mrf.mxu1  ;;  %v618_v26 = vmov 1966171168  }
 0x1f7   :  { %v383_v35 = vadd.f32 %v382_v33, %v279_v1  ;;  %v406_v40 = vmax.f32 %v381_v28, 0.0  ;;  %v469_v47 = vmul.f32 %v444_v29, %v405_v32  ;;  %v492_v60 = vadd.f32 %v491_v52, %v468_v46 }
 0x1f8   :  { %v384_v41 = vpop.f32.mrf.mxu1  ;;  %v511_v27 = vunpack.c.l.s4 %v618_v26  ;;  %v513_v28 = vlaneseq }
 0x1f9   :  { %v407_v42 = vmax.f32 %v383_v35, 0.0  ;;  %v385_v43 = vadd.f32 %v384_v41, %v279_v1  ;;  %v470_v54 = vmul.f32 %v444_v29, %v406_v40  ;;  %v480_v61 = vadd.f32 %v479_v53, %v469_v47 }
 0x1fa   :  { %v388_v48 = vpop.f32.mrf.mxu1  ;;  %v512_v32 = vunpack.c.0.s8 %v511_v27  ;;  %v514_v33 = vshrl.u32 %v513_v28, 7  ;;  %vm527_vm2 = vcmp.lt.s32.totalorder %v513_v28, 256 }
 0x1fb   :  { %v408_v49 = vmax.f32 %v385_v43, 0.0  ;;  %v389_v50 = vadd.f32 %v388_v48, %v284_v15  ;;  %v471_v56 = vmul.f32 %v449_v51, %v407_v42  ;;  %v493_v2 = vadd.f32 %v492_v60, %v470_v54 }
 0x1fc   :  { %v390_v55 = vpop.f32.mrf.mxu1  ;;  %v515_v38 = vsub.s32 %v512_v32, %v514_v33 }
 0x1fd   :  { %v409_v57 = vmax.f32 %v389_v50, 0.0  ;;  %v391_v58 = vadd.f32 %v390_v55, %v284_v15  ;;  %v472_v63 = vmul.f32 %v449_v51, %v408_v49  ;;  %v481_v4 = vadd.f32 %v480_v61, %v471_v56 }
 0x1fe   :  { %v392_v62 = vpop.f32.mrf.mxu1 }
 0x1ff   :  { %v473_v0 = vmul.f32 %v454_v59, %v409_v57  ;;  %v410_v1 = vmax.f32 %v391_v58, 0.0  ;;  %v393_v6 = vadd.f32 %v392_v62, %v289_v36  ;;  %v494_v10 = vadd.f32 %v493_v2, %v472_v63 }
 0x200   :  { %v394_v3 = vpop.f32.mrf.mxu1 }
 0x201   :  { %v474_v5 = vmul.f32 %v454_v59, %v410_v1  ;;  %v411_v7 = vmax.f32 %v393_v6, 0.0  ;;  %v395_v8 = vadd.f32 %v394_v3, %v289_v36  ;;  %v482_v11 = vadd.f32 %v481_v4, %v473_v0 }
 0x203   :  { %v475_v12 = vmul.f32 %v459_v9, %v411_v7  ;;  %v412_v13 = vmax.f32 %v395_v8, 0.0  ;;  %v495_v14 = vadd.f32 %v494_v10, %v474_v5 }
 0x205   :  { %v483_v15 = vadd.f32 %v482_v11, %v475_v12  ;;  %v476_v16 = vmul.f32 %v459_v9, %v412_v13 }
 0x207   :  { %v484_v17 = vrot.slane %v483_v15, 4  ;;  %v496_v18 = vadd.f32 %v495_v14, %v476_v16 }
 0x209   :  { %v485_v19 = vadd.f32 %v484_v17, %v483_v15  ;;  %v497_v21 = vrot.slane %v496_v18, 4 }
 0x20b   :  { %v486_v22 = vrot.slane %v485_v19, 2  ;;  %v498_v23 = vadd.f32 %v497_v21, %v496_v18 }
 0x20d   :  { %v487_v24 = vadd.f32 %v486_v22, %v485_v19  ;;  %v499_v25 = vrot.slane %v498_v23, 2 }
 0x20f   :  { %v488_v29 = vrot.slane %v487_v24, 1  ;;  %v500_v30 = vadd.f32 %v499_v25, %v498_v23 }
 0x211   :  { %v489_v31 = vadd.f32 %v488_v29, %v487_v24  ;;  %v501_v20 = vrot.slane %v500_v30, 1 }
 0x213   :  { %v502_v35 = vadd.f32 %v501_v20, %v500_v30  ;;  %v505_v36 = vadd.f32 %v504_v34, %v489_v31 }
 0x215   :  { %v506_v37 = vadd.f32 %v504_v34, %v502_v35 }
 0x217   :  { %v509_v39 = vcombine.low %v505_v36, %v506_v37 }
 0x219   :  { %v516_v40 = vrot.slane %v509_v39, %v515_v38 }
 0x21b   :  { %v523_v41 = vrot.slane %v516_v40, %v515_v38 }
 0x21d   :  { %529 = vst.msk [vmem:[#allocation3] sm:$0x3] %vm527_vm2, %v523_v41 }
 0x21e   :  { %534 = vsyncadd [#allocation4], 16  ;;  %s619_s19 = smov [#allocation3]  }
 0x21f   :  { %s536_s20 = sshll.u32 %s619_s19, 4  ;;  %s537_s20 = int_to_ptr.vmem [resolvable:$true] %s536_s20 }
 0x220   :  { %s595_s21 = scalar_lea.vmem %s537_s20, 16  ;;  %s599_s22 = scalar_lea.vmem %s537_s20, 32 }
 0x221   :  { %p596_p0 = scmp.ne.s32.totalorder %s537_s20, %s595_s21  ;;  %p600_p1 = scmp.lt.s32.totalorder %s537_s20, %s537_s20 }
 0x222   :  { %p601_p2 = scmp.lt.s32.totalorder %s599_s22, %s595_s21 }
 0x224   :  { %p602_p3 = por %p601_p2, %p600_p1 }
 0x226   :  { %p603_p4 = pnand %p602_p3, %p596_p0 }
 0x228   :  { %606 = shalt.err (!%p603_p4)
}
 0x229   :  { %539 = dma.vmem_to_hbm [thread:$0]  %s537_s20, 16, %s877_s7, [#allocation4]  }
 0x22a   :  { %615 = dma.done.wait [#allocation4], 32  }
 0x22b   :  { %616 = vsyncadd [#allocation4], 4294967264 }
 0x22c   :  { %543 = vsyncpa [#allocation4], 1 }

</bundles_post_ra>
